<compile_context>
chip_gen: v5e
topology: v5e:2x2
jax: 0.10.0
libtpu: 0.0.40
codegen_flags: <defaults>
</compile_context>

<pallas_src>
import functools
import math

import jax
import jax.numpy as jnp
from jax.experimental import pallas as pl
from jax.experimental.pallas import tpu as pltpu

_TM_TARGET = 512                      # row tile target
_TK_TARGET = 1024                     # reduction (K) tile target
_Y_RESIDENT_BYTES = 4 * 1024 * 1024   # keep Y whole in VMEM below this (v7x-safe)


def _round_up(v, m):
    return (v + m - 1) // m * m


# --------------------------------------------------------------------------- #
# Kernel bodies:  out = relu(G @ Y) [* mask]                                   #
# --------------------------------------------------------------------------- #
def _relu_gy_body(g_ref, y_ref, mask_ref, out_ref, acc_ref, *, tk, y_resident):
    """One grid step; accumulates the (tm, f_out) f32 block of G @ Y over K."""
    k = pl.program_id(1)

    @pl.when(k == 0)
    def _():
        acc_ref[...] = jnp.zeros_like(acc_ref)

    if y_resident:
        # Whole Y is VMEM-resident (DMA'd once per layer); slice the current K slab.
        start = pl.multiple_of(k * tk, 128)
        y_blk = y_ref[pl.ds(start, tk), :]
    else:
        y_blk = y_ref[...]

    # bf16 x bf16 -> f32 accumulation on the MXU.
    acc_ref[...] += jnp.dot(g_ref[...], y_blk, preferred_element_type=jnp.float32)

    @pl.when(k == pl.num_programs(1) - 1)
    def _():
        val = jnp.maximum(acc_ref[...], 0.0)              # ReLU
        if mask_ref is not None:                          # pre-scaled dropout mask
            val = val * mask_ref[...]                     # f32 * f32
        out_ref[...] = val.astype(out_ref.dtype)


def _relu_gy_kernel(g_ref, y_ref, out_ref, acc_ref, *, tk, y_resident):
    _relu_gy_body(g_ref, y_ref, None, out_ref, acc_ref, tk=tk, y_resident=y_resident)


def _relu_gy_kernel_masked(g_ref, y_ref, mask_ref, out_ref, acc_ref, *,
                           tk, y_resident):
    _relu_gy_body(g_ref, y_ref, mask_ref, out_ref, acc_ref, tk=tk,
                  y_resident=y_resident)


# --------------------------------------------------------------------------- #
# One HGNN layer kernel launcher                                               #
# --------------------------------------------------------------------------- #
def _relu_g_matmul(g_bf, y_bf, mask_f32, *, out_dtype, tm, tk):
    """out = relu(G @ Y) [* mask];  G streamed in (tm, tk) bf16 tiles."""
    n_pad = g_bf.shape[0]
    f_out = y_bf.shape[1]
    grid = (n_pad // tm, n_pad // tk)

    y_resident = n_pad * f_out * 2 <= _Y_RESIDENT_BYTES
    if y_resident:
        y_spec = pl.BlockSpec((n_pad, f_out), lambda i, k: (0, 0))   # DMA'd once
    else:
        y_spec = pl.BlockSpec((tk, f_out), lambda i, k: (k, 0))      # K-slab stream

    in_specs = [pl.BlockSpec((tm, tk), lambda i, k: (i, k)), y_spec]
    args = [g_bf, y_bf]
    if mask_f32 is not None:
        in_specs.append(pl.BlockSpec((tm, f_out), lambda i, k: (i, 0)))
        args.append(mask_f32)
        kernel = functools.partial(_relu_gy_kernel_masked, tk=tk,
                                   y_resident=y_resident)
    else:
        kernel = functools.partial(_relu_gy_kernel, tk=tk, y_resident=y_resident)

    out_bytes = jnp.dtype(out_dtype).itemsize
    # VMEM budget: G double-buffer + Y + mask + out double-buffer + f32 accumulator.
    vmem_est = (2 * tm * tk * 2
                + 2 * (n_pad if y_resident else tk) * f_out * 2
                + (2 * tm * f_out * 4 if mask_f32 is not None else 0)
                + 2 * tm * f_out * out_bytes
                + tm * f_out * 4)
    # Always well under v7x's 64 MiB physical VMEM; raise above small defaults.
    vmem_limit = min(48 * 1024 * 1024, max(32 * 1024 * 1024, (vmem_est * 3) // 2))

    cost = pl.CostEstimate(
        flops=2 * n_pad * n_pad * f_out,
        transcendentals=0,
        bytes_accessed=(n_pad * n_pad * 2               # G (bf16), dominant term
                        + n_pad * f_out * 2             # Y
                        + n_pad * f_out * out_bytes     # out
                        + (n_pad * f_out * 4 if mask_f32 is not None else 0)),
    )

    return pl.pallas_call(
        kernel,
        out_shape=jax.ShapeDtypeStruct((n_pad, f_out), out_dtype),
        grid_spec=pltpu.PrefetchScalarGridSpec(
            num_scalar_prefetch=0,
            grid=grid,
            in_specs=in_specs,
            out_specs=pl.BlockSpec((tm, f_out), lambda i, k: (i, 0)),
            scratch_shapes=[pltpu.VMEM((tm, f_out), jnp.float32)],
        ),
        compiler_params=pltpu.CompilerParams(
            dimension_semantics=("parallel", "arbitrary"),
            vmem_limit_bytes=vmem_limit,
        ),
        cost_estimate=cost,
    )(*args)


# --------------------------------------------------------------------------- #
# Full HGNN_embedding forward                                                  #
# --------------------------------------------------------------------------- #
@functools.partial(jax.jit, static_argnames=("tm", "tk"))
def hgnn_embedding(x, G, w1, b1, w2, b2, drop_mask, *, tm=None, tk=None):
    """Fused HGNN_embedding forward (two HBM-bound Pallas relu(G@Y) kernels)."""
    N, _ = x.shape
    n_hid = w1.shape[1]
    bf16, f32 = jnp.bfloat16, jnp.float32

    f_h = _round_up(n_hid, 128)      # lane-dense feature dim
    n128 = _round_up(N, 128)

    # ---- layout / tile selection (all static Python ints) ----
    if tm is None and tk is None:
        # Pad N to a 512-row quantum (or the whole 128-rounded size when smaller)
        # so tiles never silently collapse to 128.
        n_pad = _round_up(N, min(512, n128))
        tk = 1024 if n_pad % 1024 == 0 else (512 if n_pad % 512 == 0 else n_pad)
        tm = min(_TM_TARGET, n_pad)
        if n_pad // tm < 2 and n_pad >= 256:
            tm = n_pad // 2          # keep >=2 row tiles for the 2 TCs on v7x
    else:
        # Explicit tiles (testing): expect multiples of 128.
        tk = 128 if tk is None else tk
        tm = 128 if tm is None else tm
        n_pad = _round_up(N, math.lcm(tm, tk, 128))

    # G: cast to bf16; zero-pad only when needed (padded rows/cols are inert).
    g_bf = G.astype(bf16)
    if n_pad != N:
        g_bf = jnp.pad(g_bf, ((0, n_pad - N), (0, n_pad - N)))

    # ---- layer 1:  h = dropout(relu(G @ (x @ W1 + b1))) ----
    y1 = x @ w1 + b1                                        # small XLA matmul (f32)
    y1 = jnp.pad(y1, ((0, n_pad - N), (0, f_h - n_hid))).astype(bf16)
    mask_pad = jnp.pad(drop_mask.astype(f32),
                       ((0, n_pad - N), (0, f_h - n_hid)))
    h = _relu_g_matmul(g_bf, y1, mask_pad, out_dtype=bf16, tm=tm, tk=tk)

    # ---- layer 2:  out = relu(G @ (h @ W2 + b2)) ----
    w2_pad = jnp.pad(w2, ((0, f_h - n_hid), (0, f_h - n_hid))).astype(bf16)
    b2_pad = jnp.pad(b2, (0, f_h - n_hid))
    y2 = (jnp.dot(h, w2_pad, preferred_element_type=f32) + b2_pad).astype(bf16)
    out = _relu_g_matmul(g_bf, y2, None, out_dtype=f32, tm=tm, tk=tk)

    return out[:N, :n_hid]


# --------------------------------------------------------------------------- #
# Reference / parameter init / self-test                                       #
# --------------------------------------------------------------------------- #
def init_hgnn_conv_params(key, in_ft, out_ft):
    """Matches HGNN_conv.reset_parameters: uniform(-stdv, stdv), stdv=1/sqrt(out_ft)."""
    stdv = 1.0 / (out_ft ** 0.5)
    kw, kb = jax.random.split(key)
    w = jax.random.uniform(kw, (in_ft, out_ft), jnp.float32, -stdv, stdv)
    b = jax.random.uniform(kb, (out_ft,), jnp.float32, -stdv, stdv)
    return w, b


def reference_forward(x, G, w1, b1, w2, b2, drop_mask):
    """Pure-JAX reference reproducing the kernel math (bf16 G-matmuls, f32 accum)."""
    bf16, f32 = jnp.bfloat16, jnp.float32
    g_bf = G.astype(bf16)
    y1 = (x @ w1 + b1).astype(bf16)
    h = jnp.maximum(jnp.dot(g_bf, y1, preferred_element_type=f32), 0.0)
    h = (h * drop_mask).astype(bf16)
    y2 = (jnp.dot(h, w2.astype(bf16), preferred_element_type=f32) + b2).astype(bf16)
    return jnp.maximum(jnp.dot(g_bf, y2, preferred_element_type=f32), 0.0)


def _run_case(key, N, in_ch, n_hid, p_drop, tm=None, tk=None):
    kx, kg, k1, k2, kd = jax.random.split(key, 5)
    x = jax.random.normal(kx, (N, in_ch), jnp.float32)
    G = jax.random.normal(kg, (N, N), jnp.float32)
    w1, b1 = init_hgnn_conv_params(k1, in_ch, n_hid)
    w2, b2 = init_hgnn_conv_params(k2, n_hid, n_hid)

    # Deterministic host-side pre-scaled dropout mask {0, 1/(1-p)}.
    # TODO(synk): move mask generation in-kernel (pltpu.prng_random_bits) once a
    # seed-threading scheme for bit-reproducible reference checking is settled.
    keep = jax.random.bernoulli(kd, 1.0 - p_drop, (N, n_hid))
    drop_mask = keep.astype(jnp.float32) / (1.0 - p_drop)

    out = hgnn_embedding(x, G, w1, b1, w2, b2, drop_mask, tm=tm, tk=tk)
    jax.block_until_ready(out)
    assert out.shape == (N, n_hid)

    ref = reference_forward(x, G, w1, b1, w2, b2, drop_mask)
    err = float(jnp.max(jnp.abs(out - ref)))
    scale = float(jnp.max(jnp.abs(ref))) + 1.0
    assert err <= 1e-2 * scale, f"N={N}: max abs error {err} (scale {scale})"


if __name__ == "__main__":
    root = jax.random.PRNGKey(0)
    k_small, k_multi = jax.random.split(root)

    # Small single-tile case (shapes consistent with the module).
    _run_case(k_small, N=8, in_ch=16, n_hid=32, p_drop=0.5)

    # Multi-tile coverage: small explicit tiles force >=2 row tiles and >=2 K tiles
    # (exercises K-axis accumulation, resident-Y slicing, mask tiling, N padding)
    # while keeping shapes small.
    _run_case(k_multi, N=300, in_ch=48, n_hid=32, p_drop=0.5, tm=128, tk=128)

    print("KERNEL_OK")
</pallas_src>

<mosaic_0001>
module attributes {stable_mosaic.version = 11 : i64} {
  func.func @_relu_gy_kernel_masked(%arg0: i32, %arg1: i32, %arg2: memref<128x128xbf16, #tpu.memory_space<vmem>>, %arg3: memref<128x128xbf16, #tpu.memory_space<vmem>>, %arg4: memref<128x128xf32, #tpu.memory_space<vmem>>, %arg5: memref<128x128xbf16, #tpu.memory_space<vmem>>, %arg6: memref<128x128xf32, #tpu.memory_space<vmem>>) attributes {dimension_semantics = [#tpu.dimension_semantics<parallel>, #tpu.dimension_semantics<arbitrary>], iteration_bounds = array<i64: 1, 1>, scalar_prefetch = 0 : i64, scratch_operands = 1 : i64, tpu.core_type = #tpu.core_type<tc>, window_params = [{transform_indices = @transform_0, window_bounds = array<i64: 128, 128>}, {pipeline_mode = #tpu.pipeline_mode<synchronous>, transform_indices = @transform_1, window_bounds = array<i64: 128, 128>}, {transform_indices = @transform_2, window_bounds = array<i64: 128, 128>}, {transform_indices = @transform_3, window_bounds = array<i64: 128, 128>}]} {
    %c0_i32 = arith.constant 0 : i32
    %0 = arith.cmpi eq, %arg1, %c0_i32 : i32
    %1 = arith.extui %0 : i1 to i32
    %c0_i32_0 = arith.constant 0 : i32
    %2 = arith.cmpi ne, %1, %c0_i32_0 : i32
    scf.if %2 {
      %cst_9 = arith.constant 0.000000e+00 : f32
      %15 = vector.broadcast %cst_9 : f32 to vector<128x128xf32>
      %c0_10 = arith.constant 0 : index
      %c0_11 = arith.constant 0 : index
      %16 = vector.load %arg6[%c0_10, %c0_11] : memref<128x128xf32, #tpu.memory_space<vmem>>, vector<128x128xf32>
      tpu.vector_store %arg6[%c0_10, %c0_11], %15 {strides = array<i32>} : memref<128x128xf32, #tpu.memory_space<vmem>>, vector<128x128xf32>,
    } else {
    }
    %c128_i32 = arith.constant 128 : i32
    %3 = arith.muli %arg1, %c128_i32 : i32
    %4 = tpu.assume_multiple %3, 128 : i32
    %5 = arith.index_cast %4 : i32 to index
    %c0 = arith.constant 0 : index
    %6 = vector.load %arg3[%5, %c0] : memref<128x128xbf16, #tpu.memory_space<vmem>>, vector<128x128xbf16>
    %c0_1 = arith.constant 0 : index
    %c0_2 = arith.constant 0 : index
    %7 = vector.load %arg6[%c0_1, %c0_2] : memref<128x128xf32, #tpu.memory_space<vmem>>, vector<128x128xf32>
    %c0_3 = arith.constant 0 : index
    %c0_4 = arith.constant 0 : index
    %8 = vector.load %arg2[%c0_3, %c0_4] : memref<128x128xbf16, #tpu.memory_space<vmem>>, vector<128x128xbf16>
    %cst = arith.constant dense<0.000000e+00> : vector<128x128xf32>
    %9 = tpu.matmul %8, %6, %cst {dimension_numbers = #tpu.dot_dimension_numbers<[1], [0], [0], [1], [0, 0, 1, 1], [], []>} : vector<128x128xbf16>, vector<128x128xbf16>, vector<128x128xf32> -> vector<128x128xf32>
    %10 = arith.addf %7, %9 : vector<128x128xf32>
    %c0_5 = arith.constant 0 : index
    %c0_6 = arith.constant 0 : index
    %11 = vector.load %arg6[%c0_5, %c0_6] : memref<128x128xf32, #tpu.memory_space<vmem>>, vector<128x128xf32>
    tpu.vector_store %arg6[%c0_5, %c0_6], %10 {strides = array<i32>} : memref<128x128xf32, #tpu.memory_space<vmem>>, vector<128x128xf32>,
    %c0_i32_7 = arith.constant 0 : i32
    %12 = arith.cmpi eq, %arg1, %c0_i32_7 : i32
    %13 = arith.extui %12 : i1 to i32
    %c0_i32_8 = arith.constant 0 : i32
    %14 = arith.cmpi ne, %13, %c0_i32_8 : i32
    scf.if %14 {
      %c0_9 = arith.constant 0 : index
      %c0_10 = arith.constant 0 : index
      %15 = vector.load %arg6[%c0_9, %c0_10] : memref<128x128xf32, #tpu.memory_space<vmem>>, vector<128x128xf32>
      %cst_11 = arith.constant 0.000000e+00 : f32
      %16 = vector.broadcast %cst_11 : f32 to vector<128x128xf32>
      %17 = arith.maximumf %15, %16 : vector<128x128xf32>
      %c0_12 = arith.constant 0 : index
      %c0_13 = arith.constant 0 : index
      %18 = vector.load %arg4[%c0_12, %c0_13] : memref<128x128xf32, #tpu.memory_space<vmem>>, vector<128x128xf32>
      %19 = arith.mulf %17, %18 : vector<128x128xf32>
      %20 = arith.truncf %19 : vector<128x128xf32> to vector<128x128xbf16>
      %c0_14 = arith.constant 0 : index
      %c0_15 = arith.constant 0 : index
      %21 = vector.load %arg5[%c0_14, %c0_15] : memref<128x128xbf16, #tpu.memory_space<vmem>>, vector<128x128xbf16>
      tpu.vector_store %arg5[%c0_14, %c0_15], %20 {strides = array<i32>} : memref<128x128xbf16, #tpu.memory_space<vmem>>, vector<128x128xbf16>,
    } else {
    }
    return
  }
  func.func @transform_0(%arg0: i32, %arg1: i32) -> (i32, i32) {
    %c0_i32 = arith.constant 0 : i32
    return %arg0, %arg1 : i32, i32
  }
  func.func @transform_1(%arg0: i32, %arg1: i32) -> (i32, i32) {
    %c0_i32 = arith.constant 0 : i32
    %c0_i32_0 = arith.constant 0 : i32
    %c0_i32_1 = arith.constant 0 : i32
    return %c0_i32, %c0_i32_0 : i32, i32
  }
  func.func @transform_2(%arg0: i32, %arg1: i32) -> (i32, i32) {
    %c0_i32 = arith.constant 0 : i32
    %c0_i32_0 = arith.constant 0 : i32
    return %arg0, %c0_i32 : i32, i32
  }
  func.func @transform_3(%arg0: i32, %arg1: i32) -> (i32, i32) {
    %c0_i32 = arith.constant 0 : i32
    %c0_i32_0 = arith.constant 0 : i32
    return %arg0, %c0_i32 : i32, i32
  }
}

module attributes {stable_mosaic.version = 11 : i64} {
  func.func @_relu_gy_kernel(%arg0: i32, %arg1: i32, %arg2: memref<128x128xbf16, #tpu.memory_space<vmem>>, %arg3: memref<128x128xbf16, #tpu.memory_space<vmem>>, %arg4: memref<128x128xf32, #tpu.memory_space<vmem>>, %arg5: memref<128x128xf32, #tpu.memory_space<vmem>>) attributes {dimension_semantics = [#tpu.dimension_semantics<parallel>, #tpu.dimension_semantics<arbitrary>], iteration_bounds = array<i64: 1, 1>, scalar_prefetch = 0 : i64, scratch_operands = 1 : i64, tpu.core_type = #tpu.core_type<tc>, window_params = [{transform_indices = @transform_0, window_bounds = array<i64: 128, 128>}, {pipeline_mode = #tpu.pipeline_mode<synchronous>, transform_indices = @transform_1, window_bounds = array<i64: 128, 128>}, {transform_indices = @transform_2, window_bounds = array<i64: 128, 128>}]} {
    %c0_i32 = arith.constant 0 : i32
    %0 = arith.cmpi eq, %arg1, %c0_i32 : i32
    %1 = arith.extui %0 : i1 to i32
    %c0_i32_0 = arith.constant 0 : i32
    %2 = arith.cmpi ne, %1, %c0_i32_0 : i32
    scf.if %2 {
      %cst_9 = arith.constant 0.000000e+00 : f32
      %15 = vector.broadcast %cst_9 : f32 to vector<128x128xf32>
      %c0_10 = arith.constant 0 : index
      %c0_11 = arith.constant 0 : index
      %16 = vector.load %arg5[%c0_10, %c0_11] : memref<128x128xf32, #tpu.memory_space<vmem>>, vector<128x128xf32>
      tpu.vector_store %arg5[%c0_10, %c0_11], %15 {strides = array<i32>} : memref<128x128xf32, #tpu.memory_space<vmem>>, vector<128x128xf32>,
    } else {
    }
    %c128_i32 = arith.constant 128 : i32
    %3 = arith.muli %arg1, %c128_i32 : i32
    %4 = tpu.assume_multiple %3, 128 : i32
    %5 = arith.index_cast %4 : i32 to index
    %c0 = arith.constant 0 : index
    %6 = vector.load %arg3[%5, %c0] : memref<128x128xbf16, #tpu.memory_space<vmem>>, vector<128x128xbf16>
    %c0_1 = arith.constant 0 : index
    %c0_2 = arith.constant 0 : index
    %7 = vector.load %arg5[%c0_1, %c0_2] : memref<128x128xf32, #tpu.memory_space<vmem>>, vector<128x128xf32>
    %c0_3 = arith.constant 0 : index
    %c0_4 = arith.constant 0 : index
    %8 = vector.load %arg2[%c0_3, %c0_4] : memref<128x128xbf16, #tpu.memory_space<vmem>>, vector<128x128xbf16>
    %cst = arith.constant dense<0.000000e+00> : vector<128x128xf32>
    %9 = tpu.matmul %8, %6, %cst {dimension_numbers = #tpu.dot_dimension_numbers<[1], [0], [0], [1], [0, 0, 1, 1], [], []>} : vector<128x128xbf16>, vector<128x128xbf16>, vector<128x128xf32> -> vector<128x128xf32>
    %10 = arith.addf %7, %9 : vector<128x128xf32>
    %c0_5 = arith.constant 0 : index
    %c0_6 = arith.constant 0 : index
    %11 = vector.load %arg5[%c0_5, %c0_6] : memref<128x128xf32, #tpu.memory_space<vmem>>, vector<128x128xf32>
    tpu.vector_store %arg5[%c0_5, %c0_6], %10 {strides = array<i32>} : memref<128x128xf32, #tpu.memory_space<vmem>>, vector<128x128xf32>,
    %c0_i32_7 = arith.constant 0 : i32
    %12 = arith.cmpi eq, %arg1, %c0_i32_7 : i32
    %13 = arith.extui %12 : i1 to i32
    %c0_i32_8 = arith.constant 0 : i32
    %14 = arith.cmpi ne, %13, %c0_i32_8 : i32
    scf.if %14 {
      %c0_9 = arith.constant 0 : index
      %c0_10 = arith.constant 0 : index
      %15 = vector.load %arg5[%c0_9, %c0_10] : memref<128x128xf32, #tpu.memory_space<vmem>>, vector<128x128xf32>
      %cst_11 = arith.constant 0.000000e+00 : f32
      %16 = vector.broadcast %cst_11 : f32 to vector<128x128xf32>
      %17 = arith.maximumf %15, %16 : vector<128x128xf32>
      %c0_12 = arith.constant 0 : index
      %c0_13 = arith.constant 0 : index
      %18 = vector.load %arg4[%c0_12, %c0_13] : memref<128x128xf32, #tpu.memory_space<vmem>>, vector<128x128xf32>
      tpu.vector_store %arg4[%c0_12, %c0_13], %17 {strides = array<i32>} : memref<128x128xf32, #tpu.memory_space<vmem>>, vector<128x128xf32>,
    } else {
    }
    return
  }
  func.func @transform_0(%arg0: i32, %arg1: i32) -> (i32, i32) {
    %c0_i32 = arith.constant 0 : i32
    return %arg0, %arg1 : i32, i32
  }
  func.func @transform_1(%arg0: i32, %arg1: i32) -> (i32, i32) {
    %c0_i32 = arith.constant 0 : i32
    %c0_i32_0 = arith.constant 0 : i32
    %c0_i32_1 = arith.constant 0 : i32
    return %c0_i32, %c0_i32_0 : i32, i32
  }
  func.func @transform_2(%arg0: i32, %arg1: i32) -> (i32, i32) {
    %c0_i32 = arith.constant 0 : i32
    %c0_i32_0 = arith.constant 0 : i32
    return %arg0, %c0_i32 : i32, i32
  }
}

</mosaic_0001>

<bundles_post_ra>
// kernel: hgnn_embedding.2
= control target key start
LH: loop header
LB: loop body
LE: loop exit
PB: predicated region body
PF: predicated region fallthrough
CT: control target
= control target key end

     0   :  { %s660_s1 = inlined_call_operand.vmem [shape: bf16[128,128], index: 1, kind: input, shape index: {}]   ;;  %s661_s0 = inlined_call_operand.vmem [shape: bf16[128,128], index: 0, kind: input, shape index: {}]   ;;  %s662_s2 = inlined_call_operand.vmem [shape: f32[128,128], index: 2, kind: input, shape index: {}]   ;;  %s663_s3 = inlined_call_operand.vmem [shape: bf16[128,128], index: 3, kind: output, shape index: {}]  }
   0x1   :  { %v440_v0 = vld [vmem:[%s660_s1 + $0x38] sm:$0xff]  ;;  %v439_v1 = vld [vmem:[%s660_s1 + $0x30] sm:$0xff]  ;;  %v438_v2 = vld [vmem:[%s660_s1 + $0x28] sm:$0xff] }
   0x2   :  { %183 = vmatpush.bf16.msra.mxu0 %v440_v0  ;;  %496 = vmatpush.bf16.msra.mxu1 %v440_v0  ;;  %v437_v3 = vld [vmem:[%s660_s1 + $0x20] sm:$0xff]  ;;  %v436_v4 = vld [vmem:[%s660_s1 + $0x18] sm:$0xff]  ;;  %v435_v5 = vld [vmem:[%s660_s1 + $0x10] sm:$0xff] }
   0x3   :  { %497 = vmatpush.bf16.msra.mxu2 %v440_v0  ;;  %498 = vmatpush.bf16.msra.mxu3 %v440_v0  ;;  %v434_v6 = vld [vmem:[%s660_s1 + $0x8] sm:$0xff]  ;;  %v433_v7 = vld [vmem:[%s660_s1] sm:$0xff]  ;;  %v443_v9 = vld [vmem:[%s661_s0 + $0x10] sm:$0xff] }
   0x4   :  { %v441_v8 = vld [vmem:[%s661_s0] sm:$0xff]  ;;  %v447_v11 = vld [vmem:[%s661_s0 + $0x30] sm:$0xff]  ;;  %v442_v12 = vld [vmem:[%s661_s0 + $0x8] sm:$0xff] }
   0x5   :  { %v445_v10 = vld [vmem:[%s661_s0 + $0x20] sm:$0xff]  ;;  %v444_v13 = vld [vmem:[%s661_s0 + $0x18] sm:$0xff]  ;;  %v446_v14 = vld [vmem:[%s661_s0 + $0x28] sm:$0xff] }
   0x6   :  { %184 = vmatpush.bf16.msra.mxu0 %v439_v1  ;;  %499 = vmatpush.bf16.msra.mxu1 %v439_v1  ;;  %v448_v15 = vld [vmem:[%s661_s0 + $0x38] sm:$0xff]  ;;  %v299_v19 = vld [vmem:[%s662_s2] sm:$0xff]  ;;  %v300_v25 = vld [vmem:[%s662_s2 + $0x8] sm:$0xff] }
   0x7   :  { %500 = vmatpush.bf16.msra.mxu2 %v439_v1  ;;  %501 = vmatpush.bf16.msra.mxu3 %v439_v1  ;;  %v303_v23 = vld [vmem:[%s662_s2 + $0x20] sm:$0xff]  ;;  %v304_v27 = vld [vmem:[%s662_s2 + $0x28] sm:$0xff]  ;;  %v301_v55 = vld [vmem:[%s662_s2 + $0x10] sm:$0xff] }
   0x8   :  { %v307_v37 = vld [vmem:[%s662_s2 + $0x40] sm:$0xff]  ;;  %v308_v41 = vld [vmem:[%s662_s2 + $0x48] sm:$0xff]  ;;  %v305_v59 = vld [vmem:[%s662_s2 + $0x30] sm:$0xff] }
   0x9   :  { %v311_v39 = vld [vmem:[%s662_s2 + $0x60] sm:$0xff]  ;;  %v312_v43 = vld [vmem:[%s662_s2 + $0x68] sm:$0xff]  ;;  %v302_v61 = vld [vmem:[%s662_s2 + $0x18] sm:$0xff] }
   0xa   :  { %185 = vmatpush.bf16.msra.mxu0 %v438_v2  ;;  %502 = vmatpush.bf16.msra.mxu1 %v438_v2  ;;  %v306_v63 = vld [vmem:[%s662_s2 + $0x38] sm:$0xff] }
   0xb   :  { %503 = vmatpush.bf16.msra.mxu2 %v438_v2  ;;  %504 = vmatpush.bf16.msra.mxu3 %v438_v2 }
   0xe   :  { %186 = vmatpush.bf16.msra.mxu0 %v437_v3  ;;  %505 = vmatpush.bf16.msra.mxu1 %v437_v3 }
   0xf   :  { %506 = vmatpush.bf16.msra.mxu2 %v437_v3  ;;  %507 = vmatpush.bf16.msra.mxu3 %v437_v3 }
  0x12   :  { %187 = vmatpush.bf16.msra.mxu0 %v436_v4  ;;  %508 = vmatpush.bf16.msra.mxu1 %v436_v4 }
  0x13   :  { %509 = vmatpush.bf16.msra.mxu2 %v436_v4  ;;  %510 = vmatpush.bf16.msra.mxu3 %v436_v4 }
  0x16   :  { %188 = vmatpush.bf16.msra.mxu0 %v435_v5  ;;  %511 = vmatpush.bf16.msra.mxu1 %v435_v5 }
  0x17   :  { %512 = vmatpush.bf16.msra.mxu2 %v435_v5  ;;  %513 = vmatpush.bf16.msra.mxu3 %v435_v5 }
  0x1a   :  { %189 = vmatpush.bf16.msra.mxu0 %v434_v6  ;;  %514 = vmatpush.bf16.msra.mxu1 %v434_v6 }
  0x1b   :  { %515 = vmatpush.bf16.msra.mxu2 %v434_v6  ;;  %516 = vmatpush.bf16.msra.mxu3 %v434_v6 }
  0x1e   :  { %190 = vmatpush.bf16.msra.mxu0 %v433_v7  ;;  %517 = vmatpush.bf16.msra.mxu1 %v433_v7 }
  0x1f   :  { %518 = vmatpush.bf16.msra.mxu2 %v433_v7  ;;  %519 = vmatpush.bf16.msra.mxu3 %v433_v7 }
  0x21   :  { %191 = vmatmul.bf16.vlgmr.msra.gmra.mxu0 %v441_v8  ;;  %201 = vmatmul.bf16.vlgmr.msra.gmra.mxu1 %v443_v9  ;;  %v309_v9 = vld [vmem:[%s662_s2 + $0x50] sm:$0xff] }
  0x22   :  { %211 = vmatmul.bf16.vlgmr.msra.gmra.mxu2 %v445_v10  ;;  %221 = vmatmul.bf16.vlgmr.msra.gmra.mxu3 %v447_v11  ;;  %v313_v11 = vld [vmem:[%s662_s2 + $0x70] sm:$0xff] }
  0x31   :  { %196 = vmatmul.bf16.gmra.mxu0 %v442_v12  ;;  %206 = vmatmul.bf16.gmra.mxu1 %v444_v13  ;;  %v310_v13 = vld [vmem:[%s662_s2 + $0x58] sm:$0xff] }
  0x32   :  { %216 = vmatmul.bf16.gmra.mxu2 %v446_v14  ;;  %226 = vmatmul.bf16.gmra.mxu3 %v448_v15  ;;  %v314_v15 = vld [vmem:[%s662_s2 + $0x78] sm:$0xff] }
  0x9e   :  { %v192_v16 = vpop.f32.mrf.mxu0  ;;  %v202_v17 = vpop.f32.mrf.mxu1 }
  0x9f   :  { %v283_v18 = vmax.f32 %v192_v16, 0.0  ;;  %v287_v20 = vmax.f32 %v202_v17, 0.0 }
  0xa1   :  { %v315_v30 = vmul.f32 %v299_v19, %v283_v18  ;;  %v319_v31 = vmul.f32 %v303_v23, %v287_v20 }
  0xa5   :  { %v212_v21 = vpop.f32.mrf.mxu2  ;;  %v222_v22 = vpop.f32.mrf.mxu3 }
  0xa6   :  { %v194_v24 = vpop.f32.mrf.mxu0  ;;  %v204_v26 = vpop.f32.mrf.mxu1  ;;  %v291_v36 = vmax.f32 %v212_v21, 0.0  ;;  %v295_v38 = vmax.f32 %v222_v22, 0.0 }
  0xa7   :  { %v284_v28 = vmax.f32 %v194_v24, 0.0  ;;  %v288_v29 = vmax.f32 %v204_v26, 0.0 }
  0xa8   :  { %v323_v48 = vmul.f32 %v307_v37, %v291_v36  ;;  %v327_v49 = vmul.f32 %v311_v39, %v295_v38 }
  0xa9   :  { %v316_v32 = vmul.f32 %v300_v25, %v284_v28  ;;  %v320_v33 = vmul.f32 %v304_v27, %v288_v29 }
  0xab   :  { %v452_v34 = vpack.c.bf16 %v316_v32, %v315_v30  ;;  %v462_v35 = vpack.c.bf16 %v320_v33, %v319_v31 }
  0xad   :  { %453 = vst [vmem:[%s663_s3] sm:$0xff] %v452_v34   ;;  %v214_v40 = vpop.f32.mrf.mxu2  ;;  %v224_v42 = vpop.f32.mrf.mxu3 }
  0xae   :  { %490 = vst [vmem:[%s663_s3 + $0x10] sm:$0xff] %v462_v35   ;;  %v292_v44 = vmax.f32 %v214_v40, 0.0  ;;  %v296_v45 = vmax.f32 %v224_v42, 0.0  ;;  %v197_v46 = vpop.f32.mrf.mxu0  ;;  %v207_v47 = vpop.f32.mrf.mxu1 }
  0xaf   :  { %v285_v54 = vmax.f32 %v197_v46, 0.0  ;;  %v289_v56 = vmax.f32 %v207_v47, 0.0 }
  0xb0   :  { %v324_v50 = vmul.f32 %v308_v41, %v292_v44  ;;  %v328_v51 = vmul.f32 %v312_v43, %v296_v45 }
  0xb1   :  { %v317_v2 = vmul.f32 %v301_v55, %v285_v54  ;;  %v321_v3 = vmul.f32 %v305_v59, %v289_v56 }
  0xb2   :  { %v472_v52 = vpack.c.bf16 %v324_v50, %v323_v48  ;;  %v482_v53 = vpack.c.bf16 %v328_v51, %v327_v49 }
  0xb4   :  { %492 = vst [vmem:[%s663_s3 + $0x20] sm:$0xff] %v472_v52  }
  0xb5   :  { %494 = vst [vmem:[%s663_s3 + $0x30] sm:$0xff] %v482_v53   ;;  %v217_v57 = vpop.f32.mrf.mxu2  ;;  %v227_v58 = vpop.f32.mrf.mxu3 }
  0xb6   :  { %v199_v60 = vpop.f32.mrf.mxu0  ;;  %v209_v62 = vpop.f32.mrf.mxu1  ;;  %v293_v8 = vmax.f32 %v217_v57, 0.0  ;;  %v297_v10 = vmax.f32 %v227_v58, 0.0 }
  0xb7   :  { %v286_v0 = vmax.f32 %v199_v60, 0.0  ;;  %v290_v1 = vmax.f32 %v209_v62, 0.0 }
  0xb8   :  { %v325_v18 = vmul.f32 %v309_v9, %v293_v8  ;;  %v329_v19 = vmul.f32 %v313_v11, %v297_v10 }
  0xb9   :  { %v318_v4 = vmul.f32 %v302_v61, %v286_v0  ;;  %v322_v5 = vmul.f32 %v306_v63, %v290_v1 }
  0xbb   :  { %v457_v6 = vpack.c.bf16 %v318_v4, %v317_v2  ;;  %v467_v7 = vpack.c.bf16 %v322_v5, %v321_v3 }
  0xbd   :  { %489 = vst [vmem:[%s663_s3 + $0x8] sm:$0xff] %v457_v6   ;;  %v219_v12 = vpop.f32.mrf.mxu2  ;;  %v229_v14 = vpop.f32.mrf.mxu3 }
  0xbe   :  { %491 = vst [vmem:[%s663_s3 + $0x18] sm:$0xff] %v467_v7   ;;  %v294_v16 = vmax.f32 %v219_v12, 0.0  ;;  %v298_v17 = vmax.f32 %v229_v14, 0.0 }
  0xc0   :  { %v326_v20 = vmul.f32 %v310_v13, %v294_v16  ;;  %v330_v21 = vmul.f32 %v314_v15, %v298_v17 }
  0xc2   :  { %v477_v22 = vpack.c.bf16 %v326_v20, %v325_v18  ;;  %v487_v23 = vpack.c.bf16 %v330_v21, %v329_v19 }
  0xc4   :  { %493 = vst [vmem:[%s663_s3 + $0x28] sm:$0xff] %v477_v22  }
  0xc5   :  { %495 = vst [vmem:[%s663_s3 + $0x38] sm:$0xff] %v487_v23  }

// kernel: hgnn_embedding.3
= control target key start
LH: loop header
LB: loop body
LE: loop exit
PB: predicated region body
PF: predicated region fallthrough
CT: control target
= control target key end

     0   :  { %s533_s1 = inlined_call_operand.vmem [shape: bf16[128,128], index: 1, kind: input, shape index: {}]   ;;  %s534_s0 = inlined_call_operand.vmem [shape: bf16[128,128], index: 0, kind: input, shape index: {}]   ;;  %s535_s2 = inlined_call_operand.vmem [shape: f32[128,128], index: 2, kind: output, shape index: {}]  }
   0x1   :  { %v389_v0 = vld [vmem:[%s533_s1 + $0x38] sm:$0xff]  ;;  %v388_v1 = vld [vmem:[%s533_s1 + $0x30] sm:$0xff]  ;;  %v387_v2 = vld [vmem:[%s533_s1 + $0x28] sm:$0xff] }
   0x2   :  { %180 = vmatpush.bf16.msra.mxu0 %v389_v0  ;;  %398 = vmatpush.bf16.msra.mxu1 %v389_v0  ;;  %v386_v3 = vld [vmem:[%s533_s1 + $0x20] sm:$0xff]  ;;  %v385_v4 = vld [vmem:[%s533_s1 + $0x18] sm:$0xff]  ;;  %v384_v5 = vld [vmem:[%s533_s1 + $0x10] sm:$0xff] }
   0x3   :  { %399 = vmatpush.bf16.msra.mxu2 %v389_v0  ;;  %400 = vmatpush.bf16.msra.mxu3 %v389_v0  ;;  %v383_v6 = vld [vmem:[%s533_s1 + $0x8] sm:$0xff]  ;;  %v382_v7 = vld [vmem:[%s533_s1] sm:$0xff]  ;;  %v392_v9 = vld [vmem:[%s534_s0 + $0x10] sm:$0xff] }
   0x4   :  { %v390_v8 = vld [vmem:[%s534_s0] sm:$0xff]  ;;  %v396_v11 = vld [vmem:[%s534_s0 + $0x30] sm:$0xff]  ;;  %v391_v12 = vld [vmem:[%s534_s0 + $0x8] sm:$0xff] }
   0x5   :  { %v394_v10 = vld [vmem:[%s534_s0 + $0x20] sm:$0xff]  ;;  %v393_v13 = vld [vmem:[%s534_s0 + $0x18] sm:$0xff]  ;;  %v395_v14 = vld [vmem:[%s534_s0 + $0x28] sm:$0xff] }
   0x6   :  { %181 = vmatpush.bf16.msra.mxu0 %v388_v1  ;;  %401 = vmatpush.bf16.msra.mxu1 %v388_v1  ;;  %v397_v15 = vld [vmem:[%s534_s0 + $0x38] sm:$0xff] }
   0x7   :  { %402 = vmatpush.bf16.msra.mxu2 %v388_v1  ;;  %403 = vmatpush.bf16.msra.mxu3 %v388_v1 }
   0xa   :  { %182 = vmatpush.bf16.msra.mxu0 %v387_v2  ;;  %404 = vmatpush.bf16.msra.mxu1 %v387_v2 }
   0xb   :  { %405 = vmatpush.bf16.msra.mxu2 %v387_v2  ;;  %406 = vmatpush.bf16.msra.mxu3 %v387_v2 }
   0xe   :  { %183 = vmatpush.bf16.msra.mxu0 %v386_v3  ;;  %407 = vmatpush.bf16.msra.mxu1 %v386_v3 }
   0xf   :  { %408 = vmatpush.bf16.msra.mxu2 %v386_v3  ;;  %409 = vmatpush.bf16.msra.mxu3 %v386_v3 }
  0x12   :  { %184 = vmatpush.bf16.msra.mxu0 %v385_v4  ;;  %410 = vmatpush.bf16.msra.mxu1 %v385_v4 }
  0x13   :  { %411 = vmatpush.bf16.msra.mxu2 %v385_v4  ;;  %412 = vmatpush.bf16.msra.mxu3 %v385_v4 }
  0x16   :  { %185 = vmatpush.bf16.msra.mxu0 %v384_v5  ;;  %413 = vmatpush.bf16.msra.mxu1 %v384_v5 }
  0x17   :  { %414 = vmatpush.bf16.msra.mxu2 %v384_v5  ;;  %415 = vmatpush.bf16.msra.mxu3 %v384_v5 }
  0x1a   :  { %186 = vmatpush.bf16.msra.mxu0 %v383_v6  ;;  %416 = vmatpush.bf16.msra.mxu1 %v383_v6 }
  0x1b   :  { %417 = vmatpush.bf16.msra.mxu2 %v383_v6  ;;  %418 = vmatpush.bf16.msra.mxu3 %v383_v6 }
  0x1e   :  { %187 = vmatpush.bf16.msra.mxu0 %v382_v7  ;;  %419 = vmatpush.bf16.msra.mxu1 %v382_v7 }
  0x1f   :  { %420 = vmatpush.bf16.msra.mxu2 %v382_v7  ;;  %421 = vmatpush.bf16.msra.mxu3 %v382_v7 }
  0x21   :  { %188 = vmatmul.bf16.vlgmr.msra.gmra.mxu0 %v390_v8  ;;  %198 = vmatmul.bf16.vlgmr.msra.gmra.mxu1 %v392_v9 }
  0x22   :  { %208 = vmatmul.bf16.vlgmr.msra.gmra.mxu2 %v394_v10  ;;  %218 = vmatmul.bf16.vlgmr.msra.gmra.mxu3 %v396_v11 }
  0x31   :  { %193 = vmatmul.bf16.gmra.mxu0 %v391_v12  ;;  %203 = vmatmul.bf16.gmra.mxu1 %v393_v13 }
  0x32   :  { %213 = vmatmul.bf16.gmra.mxu2 %v395_v14  ;;  %223 = vmatmul.bf16.gmra.mxu3 %v397_v15 }
  0x9e   :  { %v189_v16 = vpop.f32.mrf.mxu0  ;;  %v199_v17 = vpop.f32.mrf.mxu1 }
  0x9f   :  { %v280_v18 = vmax.f32 %v189_v16, 0.0  ;;  %v284_v19 = vmax.f32 %v199_v17, 0.0 }
  0xa1   :  { %296 = vst [vmem:[%s535_s2] sm:$0xff] %v280_v18 }
  0xa2   :  { %300 = vst [vmem:[%s535_s2 + $0x20] sm:$0xff] %v284_v19 }
  0xa5   :  { %v209_v20 = vpop.f32.mrf.mxu2  ;;  %v219_v21 = vpop.f32.mrf.mxu3 }
  0xa6   :  { %v288_v22 = vmax.f32 %v209_v20, 0.0  ;;  %v292_v23 = vmax.f32 %v219_v21, 0.0  ;;  %v191_v24 = vpop.f32.mrf.mxu0  ;;  %v201_v25 = vpop.f32.mrf.mxu1 }
  0xa7   :  { %v281_v26 = vmax.f32 %v191_v24, 0.0  ;;  %v285_v27 = vmax.f32 %v201_v25, 0.0 }
  0xa8   :  { %304 = vst [vmem:[%s535_s2 + $0x40] sm:$0xff] %v288_v22 }
  0xa9   :  { %308 = vst [vmem:[%s535_s2 + $0x60] sm:$0xff] %v292_v23 }
  0xaa   :  { %297 = vst [vmem:[%s535_s2 + $0x8] sm:$0xff] %v281_v26 }
  0xab   :  { %301 = vst [vmem:[%s535_s2 + $0x28] sm:$0xff] %v285_v27 }
  0xad   :  { %v211_v28 = vpop.f32.mrf.mxu2  ;;  %v221_v29 = vpop.f32.mrf.mxu3 }
  0xae   :  { %v289_v30 = vmax.f32 %v211_v28, 0.0  ;;  %v293_v31 = vmax.f32 %v221_v29, 0.0  ;;  %v194_v32 = vpop.f32.mrf.mxu0  ;;  %v204_v33 = vpop.f32.mrf.mxu1 }
  0xaf   :  { %v282_v34 = vmax.f32 %v194_v32, 0.0  ;;  %v286_v35 = vmax.f32 %v204_v33, 0.0 }
  0xb0   :  { %305 = vst [vmem:[%s535_s2 + $0x48] sm:$0xff] %v289_v30 }
  0xb1   :  { %309 = vst [vmem:[%s535_s2 + $0x68] sm:$0xff] %v293_v31 }
  0xb2   :  { %298 = vst [vmem:[%s535_s2 + $0x10] sm:$0xff] %v282_v34 }
  0xb3   :  { %302 = vst [vmem:[%s535_s2 + $0x30] sm:$0xff] %v286_v35 }
  0xb5   :  { %v214_v36 = vpop.f32.mrf.mxu2  ;;  %v224_v37 = vpop.f32.mrf.mxu3 }
  0xb6   :  { %v290_v38 = vmax.f32 %v214_v36, 0.0  ;;  %v294_v39 = vmax.f32 %v224_v37, 0.0  ;;  %v196_v40 = vpop.f32.mrf.mxu0  ;;  %v206_v41 = vpop.f32.mrf.mxu1 }
  0xb7   :  { %v283_v42 = vmax.f32 %v196_v40, 0.0  ;;  %v287_v43 = vmax.f32 %v206_v41, 0.0 }
  0xb8   :  { %306 = vst [vmem:[%s535_s2 + $0x50] sm:$0xff] %v290_v38 }
  0xb9   :  { %310 = vst [vmem:[%s535_s2 + $0x70] sm:$0xff] %v294_v39 }
  0xba   :  { %299 = vst [vmem:[%s535_s2 + $0x18] sm:$0xff] %v283_v42 }
  0xbb   :  { %303 = vst [vmem:[%s535_s2 + $0x38] sm:$0xff] %v287_v43 }
  0xbd   :  { %v216_v44 = vpop.f32.mrf.mxu2  ;;  %v226_v45 = vpop.f32.mrf.mxu3 }
  0xbe   :  { %v291_v46 = vmax.f32 %v216_v44, 0.0  ;;  %v295_v47 = vmax.f32 %v226_v45, 0.0 }
  0xc0   :  { %307 = vst [vmem:[%s535_s2 + $0x58] sm:$0xff] %v291_v46 }
  0xc1   :  { %311 = vst [vmem:[%s535_s2 + $0x78] sm:$0xff] %v295_v47 }

</bundles_post_ra>
